<compile_context>
chip_gen: v7x
topology: tpu7x:2x2x1
jax: 0.10.0
libtpu: 0.0.40
codegen_flags: <defaults>
</compile_context>

<pallas_src>
import jax
import jax.numpy as jnp
from jax.experimental import pallas as pl
from jax.experimental.pallas import tpu as pltpu


def _round_up(x, m):
    return (x + m - 1) // m * m


def _cdiv(a, b):
    return -(-a // b)


def _num_tensorcores():
    # Only v7x exposes 2 TensorCores per chip to a single Pallas program via
    # the "parallel" grid-axis split; v5e / v6e have a single TC where an
    # extra parallel range is pure bookkeeping overhead.
    try:
        kind = jax.devices()[0].device_kind.lower()
    except Exception:
        return 1
    return 2 if "v7" in kind else 1


def l_free_hand(xyz_estim, xyz_target, wf=1.0, max_block_rows=None):
    assert xyz_estim.shape == xyz_target.shape
    B, N, D = xyz_estim.shape
    assert D >= 18, "feature dim must cover indices 15,16,17"
    M = B * N

    # Contiguous row-major reshape: a free view, no copy (unlike jnp.pad).
    x = xyz_estim.reshape(M, D)
    y = xyz_target.reshape(M, D)

    itemsize = jnp.dtype(x.dtype).itemsize
    # Only the first <=128 lanes are needed (they contain columns 15..17).
    D_blk = D if D <= 128 else 128

    # --- VMEM-aware row-tile sizing --------------------------------------
    # A (TM, D_blk) block is physically padded in VMEM to a multiple of the
    # (sublane, 128-lane) tile, so budget with the *padded* footprint.
    lane_pad = _round_up(D_blk, 128)
    sub_mult = max(8, 32 // itemsize)           # 8 f32, 16 bf16, 32 int8/fp8
    BLOCK_BUDGET_BYTES = 4 * 1024 * 1024        # per input block (padded)
    rows_fit = (BLOCK_BUDGET_BYTES // (lane_pad * itemsize)) // sub_mult * sub_mult
    rows_fit = max(sub_mult, rows_fit)
    TM = min(rows_fit, _round_up(M, sub_mult))
    if max_block_rows is not None:
        TM = min(TM, max(sub_mult, max_block_rows // sub_mult * sub_mult))

    total_tiles = _cdiv(M, TM)
    NC = min(_num_tensorcores(), total_tiles)
    tiles_per_core = _cdiv(total_tiles, NC)

    def in_map(c, i):
        # Clamp so out-of-range (duplicate) grid points still DMA a valid
        # block; their contribution is zeroed by the in-kernel row mask.
        t = jnp.minimum(c * tiles_per_core + i, total_tiles - 1)
        return (t, 0)

    def kernel(x_ref, y_ref, o_ref, acc_ref):
        c = pl.program_id(0)
        i = pl.program_id(1)

        @pl.when(i == 0)
        def _init():
            acc_ref[...] = jnp.zeros_like(acc_ref)

        # Unclamped global tile index -> true row offset of this block.
        row_start = (c * tiles_per_core + i) * TM

        xf = x_ref[...].astype(jnp.float32)
        yf = y_ref[...].astype(jnp.float32)
        diff = jnp.abs(xf - yf)                                # [TM, D_blk]

        # Row-validity mask: handles the ragged tail (M % TM != 0) and
        # duplicated tiles of an uneven core split — no jnp.pad anywhere.
        row = jax.lax.broadcasted_iota(jnp.int32, diff.shape, 0) + row_start
        diff = jnp.where(row < M, diff, 0.0)

        # Column-wise partial sums accumulate into the vector scratch; the
        # 15..17 column selection commutes with the row reduction and is
        # applied once at finalize (no per-tile column iota / select).
        acc_ref[...] = acc_ref[...] + jnp.sum(diff, axis=0, keepdims=True)

        @pl.when(i == pl.num_programs(1) - 1)
        def _finalize():
            col = jax.lax.broadcasted_iota(jnp.int32, acc_ref.shape, 1)
            sel = jnp.where((col >= 15) & (col < 18), acc_ref[...], 0.0)
            total = jnp.sum(sel, keepdims=True)                # (1, 1)
            # This core's raw partial sum goes into element [0, 0] of its own
            # (8, 128) output block; all other elements are zero so the
            # wrapper can simply sum the whole output.
            r = jax.lax.broadcasted_iota(jnp.int32, o_ref.shape, 0)
            cc = jax.lax.broadcasted_iota(jnp.int32, o_ref.shape, 1)
            o_ref[...] = jnp.where((r == 0) & (cc == 0), total, 0.0)

    # NOTE: for D > 128 (strided first-128-lane reads) a third pipeline
    # buffer (pipeline_mode=pl.Buffered(3)) could hide DMA issue jitter; kept
    # at the default double-buffering for maximal portability.
    out = pl.pallas_call(
        kernel,
        out_shape=jax.ShapeDtypeStruct((NC * 8, 128), jnp.float32),
        grid_spec=pltpu.PrefetchScalarGridSpec(
            num_scalar_prefetch=0,
            grid=(NC, tiles_per_core),
            in_specs=[
                pl.BlockSpec((TM, D_blk), in_map),
                pl.BlockSpec((TM, D_blk), in_map),
            ],
            out_specs=pl.BlockSpec((8, 128), lambda c, i: (c, 0)),
            scratch_shapes=[pltpu.VMEM((1, D_blk), jnp.float32)],
        ),
        compiler_params=pltpu.CompilerParams(
            dimension_semantics=("parallel", "arbitrary"),
            vmem_limit_bytes=32 * 1024 * 1024,
        ),
    )(x, y)

    # Sum the per-core partials (every other output element is zero), then
    # apply the mean over the ORIGINAL M and the wf scale (traced-wf safe).
    return jnp.sum(out) * (jnp.asarray(wf, jnp.float32) / M)


if __name__ == "__main__":
    # Small deterministic inputs: B=2 batches, N=7 points, D=21 features.
    # M = 14 is deliberately not a multiple of 8 so the ragged-tail row mask
    # is exercised.
    key = jax.random.PRNGKey(0)
    k1, k2 = jax.random.split(key)
    B, N, D = 2, 7, 21
    xyz_estim = jax.random.normal(k1, (B, N, D), dtype=jnp.float32)
    xyz_target = jax.random.normal(k2, (B, N, D), dtype=jnp.float32)

    wf = 1.0
    # Pure-JAX reference (same semantics as the PyTorch module).
    ref = wf * jnp.mean(
        jnp.sum(jnp.abs(xyz_estim - xyz_target)[:, :, jnp.array([15, 16, 17])], axis=2)
    )

    # 1) Default tiling (single tile).
    loss = jax.block_until_ready(l_free_hand(xyz_estim, xyz_target, wf=wf))
    assert jnp.allclose(loss, ref, rtol=1e-5, atol=1e-5), (loss, ref)

    # 2) Tiny forced tiles: exercises the multi-tile accumulator, the ragged
    #    last block and the (possibly 2-TensorCore) grid split.
    loss_tiled = jax.block_until_ready(
        l_free_hand(xyz_estim, xyz_target, wf=wf, max_block_rows=8)
    )
    assert jnp.allclose(loss_tiled, ref, rtol=1e-5, atol=1e-5), (loss_tiled, ref)

    print("KERNEL_OK")
</pallas_src>

<mosaic_0001>
module attributes {stable_mosaic.version = 11 : i64} {
  func.func @kernel(%arg0: i32, %arg1: i32, %arg2: memref<16x21xf32, #tpu.memory_space<vmem>>, %arg3: memref<16x21xf32, #tpu.memory_space<vmem>>, %arg4: memref<8x128xf32, #tpu.memory_space<vmem>>, %arg5: memref<1x21xf32, #tpu.memory_space<vmem>>) attributes {dimension_semantics = [#tpu.dimension_semantics<parallel>, #tpu.dimension_semantics<arbitrary>], iteration_bounds = array<i64: 1, 1>, scalar_prefetch = 0 : i64, scratch_operands = 1 : i64, tpu.core_type = #tpu.core_type<tc>, window_params = [{transform_indices = @transform_0, window_bounds = array<i64: 16, 21>}, {transform_indices = @transform_1, window_bounds = array<i64: 16, 21>}, {transform_indices = @transform_2, window_bounds = array<i64: 8, 128>}]} {
    %c0_i32 = arith.constant 0 : i32
    %0 = arith.cmpi eq, %arg1, %c0_i32 : i32
    %1 = arith.extui %0 : i1 to i32
    %c0_i32_0 = arith.constant 0 : i32
    %2 = arith.cmpi ne, %1, %c0_i32_0 : i32
    scf.if %2 {
      %cst_11 = arith.constant 0.000000e+00 : f32
      %25 = vector.broadcast %cst_11 : f32 to vector<1x21xf32>
      %c0_12 = arith.constant 0 : index
      %c0_13 = arith.constant 0 : index
      %26 = vector.load %arg5[%c0_12, %c0_13] : memref<1x21xf32, #tpu.memory_space<vmem>>, vector<1x21xf32>
      tpu.vector_store %arg5[%c0_12, %c0_13], %25 {strides = array<i32>} : memref<1x21xf32, #tpu.memory_space<vmem>>, vector<1x21xf32>,
    } else {
    }
    %c1_i32 = arith.constant 1 : i32
    %3 = arith.muli %arg0, %c1_i32 : i32
    %4 = arith.addi %3, %arg1 : i32
    %c16_i32 = arith.constant 16 : i32
    %5 = arith.muli %4, %c16_i32 : i32
    %c0 = arith.constant 0 : index
    %c0_1 = arith.constant 0 : index
    %6 = vector.load %arg2[%c0, %c0_1] : memref<16x21xf32, #tpu.memory_space<vmem>>, vector<16x21xf32>
    %c0_2 = arith.constant 0 : index
    %c0_3 = arith.constant 0 : index
    %7 = vector.load %arg3[%c0_2, %c0_3] : memref<16x21xf32, #tpu.memory_space<vmem>>, vector<16x21xf32>
    %8 = arith.subf %6, %7 : vector<16x21xf32>
    %9 = math.absf %8 : vector<16x21xf32>
    %10 = tpu.iota {dimensions = array<i32: 0>} : vector<16x21xi32>
    %11 = vector.broadcast %5 : i32 to vector<16x21xi32>
    %12 = arith.addi %10, %11 : vector<16x21xi32>
    %c14_i32 = arith.constant 14 : i32
    %13 = vector.broadcast %c14_i32 : i32 to vector<16x21xi32>
    %14 = arith.cmpi slt, %12, %13 : vector<16x21xi32>
    %cst = arith.constant 0.000000e+00 : f32
    %15 = vector.broadcast %cst : f32 to vector<16x21xf32>
    %16 = arith.select %14, %9, %15 : vector<16x21xi1>, vector<16x21xf32>
    %c0_4 = arith.constant 0 : index
    %c0_5 = arith.constant 0 : index
    %17 = vector.load %arg5[%c0_4, %c0_5] : memref<1x21xf32, #tpu.memory_space<vmem>>, vector<1x21xf32>
    %cst_6 = arith.constant dense<0.000000e+00> : vector<21xf32>
    %18 = vector.multi_reduction <add>, %16, %cst_6 [0] : vector<16x21xf32> to vector<21xf32>
    %19 = vector.shape_cast %18 : vector<21xf32> to vector<1x21xf32>
    %20 = arith.addf %17, %19 : vector<1x21xf32>
    %c0_7 = arith.constant 0 : index
    %c0_8 = arith.constant 0 : index
    %21 = vector.load %arg5[%c0_7, %c0_8] : memref<1x21xf32, #tpu.memory_space<vmem>>, vector<1x21xf32>
    tpu.vector_store %arg5[%c0_7, %c0_8], %20 {strides = array<i32>} : memref<1x21xf32, #tpu.memory_space<vmem>>, vector<1x21xf32>,
    %c0_i32_9 = arith.constant 0 : i32
    %22 = arith.cmpi eq, %arg1, %c0_i32_9 : i32
    %23 = arith.extui %22 : i1 to i32
    %c0_i32_10 = arith.constant 0 : i32
    %24 = arith.cmpi ne, %23, %c0_i32_10 : i32
    scf.if %24 {
      %25 = tpu.iota {dimensions = array<i32: 1>} : vector<1x21xi32>
      %c15_i32 = arith.constant 15 : i32
      %26 = vector.broadcast %c15_i32 : i32 to vector<1x21xi32>
      %27 = arith.cmpi sge, %25, %26 : vector<1x21xi32>
      %c18_i32 = arith.constant 18 : i32
      %28 = vector.broadcast %c18_i32 : i32 to vector<1x21xi32>
      %29 = arith.cmpi slt, %25, %28 : vector<1x21xi32>
      %30 = arith.andi %27, %29 : vector<1x21xi1>
      %c0_11 = arith.constant 0 : index
      %c0_12 = arith.constant 0 : index
      %31 = vector.load %arg5[%c0_11, %c0_12] : memref<1x21xf32, #tpu.memory_space<vmem>>, vector<1x21xf32>
      %cst_13 = arith.constant 0.000000e+00 : f32
      %32 = vector.broadcast %cst_13 : f32 to vector<1x21xf32>
      %33 = arith.select %30, %31, %32 : vector<1x21xi1>, vector<1x21xf32>
      %34 = vector.shape_cast %33 : vector<1x21xf32> to vector<1x1x21xf32>
      %cst_14 = arith.constant dense<0.000000e+00> : vector<1xf32>
      %35 = vector.multi_reduction <add>, %34, %cst_14 [1, 2] : vector<1x1x21xf32> to vector<1xf32>
      %36 = vector.shape_cast %35 : vector<1xf32> to vector<1x1x1xf32>
      %37 = vector.extract %36[0, 0, 0] : f32 from vector<1x1x1xf32>
      %38 = vector.broadcast %37 : f32 to vector<1x1xf32>
      %39 = tpu.iota {dimensions = array<i32: 0>} : vector<8x128xi32>
      %40 = tpu.iota {dimensions = array<i32: 1>} : vector<8x128xi32>
      %c0_i32_15 = arith.constant 0 : i32
      %41 = vector.broadcast %c0_i32_15 : i32 to vector<8x128xi32>
      %42 = arith.cmpi eq, %39, %41 : vector<8x128xi32>
      %c0_i32_16 = arith.constant 0 : i32
      %43 = vector.broadcast %c0_i32_16 : i32 to vector<8x128xi32>
      %44 = arith.cmpi eq, %40, %43 : vector<8x128xi32>
      %45 = arith.andi %42, %44 : vector<8x128xi1>
      %cst_17 = arith.constant 0.000000e+00 : f32
      %46 = vector.shape_cast %38 : vector<1x1xf32> to vector<1x1xf32>
      %47 = vector.broadcast %46 : vector<1x1xf32> to vector<8x128xf32>
      %48 = vector.broadcast %cst_17 : f32 to vector<8x128xf32>
      %49 = arith.select %45, %47, %48 : vector<8x128xi1>, vector<8x128xf32>
      %c0_18 = arith.constant 0 : index
      %c0_19 = arith.constant 0 : index
      %50 = vector.load %arg4[%c0_18, %c0_19] : memref<8x128xf32, #tpu.memory_space<vmem>>, vector<8x128xf32>
      tpu.vector_store %arg4[%c0_18, %c0_19], %49 {strides = array<i32>} : memref<8x128xf32, #tpu.memory_space<vmem>>, vector<8x128xf32>,
    } else {
    }
    return
  }
  func.func @transform_0(%arg0: i32, %arg1: i32) -> (i32, i32) {
    %c1_i32 = arith.constant 1 : i32
    %0 = arith.muli %arg0, %c1_i32 : i32
    %1 = arith.addi %0, %arg1 : i32
    %c0_i32 = arith.constant 0 : i32
    %2 = arith.minsi %1, %c0_i32 : i32
    %c0_i32_0 = arith.constant 0 : i32
    %c0_i32_1 = arith.constant 0 : i32
    return %2, %c0_i32_0 : i32, i32
  }
  func.func @transform_1(%arg0: i32, %arg1: i32) -> (i32, i32) {
    %c1_i32 = arith.constant 1 : i32
    %0 = arith.muli %arg0, %c1_i32 : i32
    %1 = arith.addi %0, %arg1 : i32
    %c0_i32 = arith.constant 0 : i32
    %2 = arith.minsi %1, %c0_i32 : i32
    %c0_i32_0 = arith.constant 0 : i32
    %c0_i32_1 = arith.constant 0 : i32
    return %2, %c0_i32_0 : i32, i32
  }
  func.func @transform_2(%arg0: i32, %arg1: i32) -> (i32, i32) {
    %c0_i32 = arith.constant 0 : i32
    %c0_i32_0 = arith.constant 0 : i32
    return %arg0, %c0_i32 : i32, i32
  }
}

</mosaic_0001>

<bundles_post_ra>
// kernel: tpu_custom_call.1
= control target key start
LH: loop header
LB: loop body
LE: loop exit
PB: predicated region body
PF: predicated region fallthrough
CT: control target
= control target key end

     0   :  { %7 = vsyncpa [#allocation4], 0  ;;  %s286_s0 = inlined_call_operand.hbm [shape: f32[14,21], index: 0, kind: input, shape index: {}]   ;;  %s287_s1 = inlined_call_operand.hbm [shape: f32[14,21], index: 1, kind: input, shape index: {}]   ;;  %s288_s2 = inlined_call_operand.hbm [shape: f32[8,128], index: 2, kind: output, shape index: {}]  }
   0x1   :  { %8 = vsyncpa [#allocation7], 0 }
   0x2   :  { %9 = vsyncpa [#allocation5], 0  ;;  %s226_s9 = smov [#allocation3]   ;;  %s154_s13 = scalar_lea.hbm %s286_s0, 256 }
   0x3   :  { %s21_s10 = sshll.u32 %s226_s9, 4  ;;  %p155_p0 = scmp.ne.s32.totalorder %s286_s0, %s154_s13  ;;  %s22_s10 = int_to_ptr.vmem [resolvable:$true] %s21_s10 }
   0x4   :  { %p158_p1 = scmp.lt.u32.totalorder %s154_s13, %s286_s0 }
   0x6   :  { %p160_p2 = pnand %p158_p1, %p155_p0 }
   0x8   :  { %163 = shalt.err (!%p160_p2)
}
   0x9   :  { %s164_s18 = scalar_lea.vmem %s22_s10, 256  ;;  %p169_p4 = scmp.lt.s32.totalorder %s22_s10, %s22_s10 }
   0xa   :  { %p165_p3 = scmp.ne.s32.totalorder %s22_s10, %s164_s18  ;;  %p170_p5 = scmp.lt.s32.totalorder %s164_s18, %s164_s18 }
   0xc   :  { %p171_p6 = por %p170_p5, %p169_p4 }
   0xe   :  { %p172_p7 = pnand %p171_p6, %p165_p3 }
  0x10   :  { %175 = shalt.err (!%p172_p7)
}
  0x11   :  { %s227_s19 = smov 128   ;;  %s228_s20 = smov 8  }
  0x12   :  { %27 = dma.hbm_to_vmem [thread:$0]  %s286_s0, 256, %s22_s10, [#allocation4], %s227_s19, %s227_s19, %s228_s20  }
  0x13   :  { %s229_s23 = smov [#allocation6]   ;;  %s176_s27 = scalar_lea.hbm %s287_s1, 256 }
  0x14   :  { %s39_s24 = sshll.u32 %s229_s23, 4  ;;  %p177_p8 = scmp.ne.s32.totalorder %s287_s1, %s176_s27  ;;  %s40_s24 = int_to_ptr.vmem [resolvable:$true] %s39_s24 }
  0x15   :  { %p180_p9 = scmp.lt.u32.totalorder %s176_s27, %s287_s1 }
  0x17   :  { %p182_p10 = pnand %p180_p9, %p177_p8 }
  0x19   :  { %185 = shalt.err (!%p182_p10)
}
  0x1a   :  { %s186_s4 = scalar_lea.vmem %s40_s24, 256  ;;  %p191_p12 = scmp.lt.s32.totalorder %s40_s24, %s40_s24 }
  0x1b   :  { %p187_p11 = scmp.ne.s32.totalorder %s40_s24, %s186_s4  ;;  %p192_p13 = scmp.lt.s32.totalorder %s186_s4, %s186_s4 }
  0x1d   :  { %p193_p0 = por %p192_p13, %p191_p12 }
  0x1f   :  { %p194_p1 = pnand %p193_p0, %p187_p11 }
  0x21   :  { %197 = shalt.err (!%p194_p1)
}
  0x22   :  { %45 = dma.hbm_to_vmem [thread:$0]  %s287_s1, 256, %s40_s24, [#allocation7], %s227_s19, %s227_s19, %s228_s20  }
  0x23   :  { %220 = dma.done.wait [#allocation4], 256  }
  0x24   :  { %221 = vsyncadd [#allocation4], 4294967040 }
  0x25   :  { %222 = dma.done.wait [#allocation7], 256  }
  0x26   :  { %223 = vsyncadd [#allocation7], 4294967040  ;;  %vm64_vm0 = vcmask 163840   ;;  %v76_v0 = vlaneseq  ;;  %v230_v1 = vmov 0.0   ;;  %v68_v4 = vld [vmem:[#allocation3] sm:$0xff]  ;;  %v69_v5 = vld [vmem:[#allocation3 + $0x8] sm:$0xff] }
  0x27   :  { %65 = vst.msk [vmem:[#allocation2] sm:$0x1] %vm64_vm0, %v230_v1  ;;  %v70_v6 = vld [vmem:[#allocation6] sm:$0xff]  ;;  %v71_v7 = vld [vmem:[#allocation6 + $0x8] sm:$0xff]  ;;  %vm87_vm1 = vcmask 171008   ;;  %s231_s1 = smov [#allocation8]  }
  0x28   :  { %v77_v2 = vshrl.u32 %v76_v0, 7  ;;  %v72_v8 = vsub.f32 %v68_v4, %v70_v6  ;;  %v73_v9 = vsub.f32 %v69_v5, %v71_v7  ;;  %v104_v24 = vand.u32 127, %v76_v0  ;;  %s132_s6 = sshll.u32 %s231_s1, 4  ;;  %s133_s6 = int_to_ptr.vmem [resolvable:$true] %s132_s6 }
  0x29   :  { %s198_s8 = scalar_lea.vmem %s133_s6, 128  ;;  %p203_p3 = scmp.lt.s32.totalorder %s133_s6, %s133_s6 }
  0x2a   :  { %v78_v3 = vadd.s32 8, %v77_v2  ;;  %v74_v10 = vand.u32 2147483647, %v72_v8  ;;  %v75_v11 = vand.u32 2147483647, %v73_v9  ;;  %vm105_vm3 = vcmp.ge.s32.totalorder %v104_v24, 15  ;;  %p199_p2 = scmp.ne.s32.totalorder %s133_s6, %s198_s8  ;;  %p204_p4 = scmp.lt.s32.totalorder %s198_s8, %s198_s8 }
  0x2b   :  { %vm106_vm4 = vcmp.lt.s32.totalorder %v104_v24, 18  ;;  %vm120_vm6 = vcmp.eq.s32.totalorder %v77_v2, 0  ;;  %vm121_vm7 = vcmp.eq.s32.totalorder %v104_v24, 0 }
  0x2c   :  { %vm83_vm2 = vcmp.lt.s32.totalorder %v78_v3, 14  ;;  %v88_v12 = vsel %vm87_vm1, %v74_v10, 0.0  ;;  %vm107_vm5 = vmand %vm105_vm3, %vm106_vm4  ;;  %p205_p5 = por %p204_p4, %p203_p3 }
  0x2d   :  { %v85_v13 = vsel %vm83_vm2, %v75_v11, 0.0  ;;  %vm122_vm8 = vmand %vm120_vm6, %vm121_vm7 }
  0x2e   :  { %v89_v14 = vsel %vm87_vm1, %v85_v13, 0.0  ;;  %v86_v21 = vld [vmem:[#allocation2] sm:$0x1]  ;;  %p206_p6 = pnand %p205_p5, %p199_p2 }
  0x2f   :  { %v90_v15 = vadd.f32 %v89_v14, %v88_v12 }
  0x31   :  { %v91_v16 = vrot.slane %v90_v15, 4 }
  0x33   :  { %v92_v17 = vadd.f32 %v91_v16, %v90_v15 }
  0x35   :  { %v93_v18 = vrot.slane %v92_v17, 2 }
  0x37   :  { %v94_v19 = vadd.f32 %v93_v18, %v92_v17 }
  0x39   :  { %v95_v20 = vrot.slane %v94_v19, 1 }
  0x3b   :  { %v96_v22 = vadd.f32 %v95_v20, %v94_v19 }
  0x3d   :  { %v97_v23 = vadd.f32 %v96_v22, %v86_v21 }
  0x3f   :  { %99 = vst.msk [vmem:[#allocation2] sm:$0x1] %vm64_vm0, %v97_v23 }
  0x46   :  { %v108_v25 = vld [vmem:[#allocation2] sm:$0x1] }
  0x47   :  { %v109_v26 = vsel %vm107_vm5, %v108_v25, 0.0 }
  0x48   :  { %v110_v27 = vsel %vm64_vm0, %v109_v26, 0.0 }
  0x49   :  { %111 = vadd.xlane.f32.xlu0 %v110_v27 }
  0xd6   :  { %v112_v28 = vpop.xlane.xlu0 %111 }
  0xd7   :  { %v113_v29 = vrot.slane %v112_v28, 4 }
  0xd9   :  { %v114_v30 = vadd.f32 %v113_v29, %v112_v28 }
  0xdb   :  { %v115_v31 = vrot.slane %v114_v30, 2 }
  0xdd   :  { %v116_v32 = vadd.f32 %v115_v31, %v114_v30 }
  0xdf   :  { %v117_v33 = vrot.slane %v116_v32, 1 }
  0xe1   :  { %v118_v34 = vadd.f32 %v117_v33, %v116_v32 }
  0xe3   :  { %146 = vpush %v118_v34 }
 0x114   :  { %s147_s7 = spop %146 }
 0x115   :  { %v123_v35 = vstv %s147_s7 }
 0x116   :  { %v124_v36 = vsel %vm122_vm8, %v123_v35, 0.0 }
 0x117   :  { %125 = vst [vmem:[#allocation8] sm:$0xff] %v124_v36 }
 0x118   :  { %209 = shalt.err (!%p206_p6)
}
 0x119   :  { %s210_s11 = scalar_lea.hbm %s288_s2, 128 }
 0x11a   :  { %p211_p7 = scmp.ne.s32.totalorder %s288_s2, %s210_s11  ;;  %p214_p8 = scmp.lt.u32.totalorder %s210_s11, %s288_s2 }
 0x11c   :  { %p216_p9 = pnand %p214_p8, %p211_p7 }
 0x11e   :  { %219 = shalt.err (!%p216_p9)
}
 0x11f   :  { %135 = dma.vmem_to_hbm [thread:$0]  %s133_s6, 128, %s288_s2, [#allocation5]  }
 0x120   :  { %224 = dma.done.wait [#allocation5], 128  }
 0x121   :  { %225 = vsyncadd [#allocation5], 4294967168 }
 0x122   :  { %139 = vsyncpa [#allocation4], 1 }
 0x123   :  { %140 = vsyncpa [#allocation7], 1 }
 0x124   :  { %141 = vsyncpa [#allocation5], 1 }

</bundles_post_ra>
